<compile_context>
chip_gen: v7x
topology: tpu7x:2x2x1
jax: 0.10.0
libtpu: 0.0.40
codegen_flags: <defaults>
</compile_context>

<pallas_src>
import functools

import jax
import jax.numpy as jnp
from jax.experimental import pallas as pl
from jax.experimental.pallas import tpu as pltpu


# ----------------------------------------------------------------------------
# Helpers
# ----------------------------------------------------------------------------
def _vmem_limit_bytes():
    """Per-generation scoped-VMEM limit: ~3/4 of physical, capped at 96 MiB."""
    try:
        phys = pltpu.get_tpu_info().vmem_capacity_bytes  # 128 MiB v5e/v6e, 64 MiB v7x
    except Exception:
        phys = 64 * 1024 * 1024                          # conservative default
    return int(min((phys * 3) // 4, 96 * 1024 * 1024))


def _lane_tile(n, cap_elems):
    """Lane-dim tile for a cdiv grid over n: full extent if it fits, else the
    largest multiple of 128 that fits (always a legal TPU block shape)."""
    cap_elems = max(int(cap_elems), 1)
    if n <= cap_elems:
        return n
    return min(n, max(128, (cap_elems // 128) * 128))


def _channel_sum(x):
    """f32 sum over the last (L) axis of a (bt, C, l) tile -> (bt, C).

    Uses a batched MXU contraction against a ones vector, so the big tile is
    never upcast to f32 on the VPU and the cross-lane reduce is avoided
    (the trailing size-1 reduce only relayouts the tiny (bt, C) result).
    """
    bt, _, l = x.shape
    ones = jnp.ones((bt, l, 1), dtype=x.dtype)
    s3 = jax.lax.dot_general(
        x, ones,
        dimension_numbers=(((2,), (1,)), ((0,), (0,))),
        preferred_element_type=jnp.float32)              # (bt, C, 1) f32
    return jnp.sum(s3, axis=-1)                          # (bt, C) f32


# ----------------------------------------------------------------------------
# Fused kernel: mean over L -> FC -> sigmoid -> scale, one pass over x.
# ----------------------------------------------------------------------------
def _fused_kernel(x_ref, w1_ref, b1_ref, w2_ref, b2_ref, o_ref, *, seq_len):
    avg = _channel_sum(x_ref[...]) * (1.0 / seq_len)                 # (bt, C)
    h = jnp.dot(avg, w1_ref[...], preferred_element_type=jnp.float32) + b1_ref[...]
    h = jnp.maximum(h, 0.0)                                          # (bt, H)
    a = jnp.dot(h, w2_ref[...], preferred_element_type=jnp.float32) + b2_ref[...]
    gate = jax.nn.sigmoid(a)[:, :, None].astype(x_ref.dtype)         # (bt, C, 1)
    o_ref[...] = x_ref[...] * gate


# ----------------------------------------------------------------------------
# Fallback pass 1: channel sums accumulated across L tiles + FC + sigmoid.
# ----------------------------------------------------------------------------
def _pool_fc_kernel(x_ref, w1_ref, b1_ref, w2_ref, b2_ref, attn_ref, acc_ref,
                    *, seq_len, needs_mask):
    li = pl.program_id(1)

    @pl.when(li == 0)
    def _init():
        acc_ref[...] = jnp.zeros_like(acc_ref)

    x = x_ref[...]                                       # (1, C, l_tile)
    if needs_mask:
        # cdiv grid: zero out the padding of the (partial) last L tile.
        l_tile = x_ref.shape[-1]
        lane = jax.lax.broadcasted_iota(jnp.int32, x.shape, 2)
        x = jnp.where(lane + li * l_tile < seq_len, x, jnp.zeros_like(x))
    acc_ref[...] += _channel_sum(x)                      # (1, C) f32

    @pl.when(li == pl.num_programs(1) - 1)
    def _finalize():
        avg = acc_ref[...] * (1.0 / seq_len)
        h = jnp.dot(avg, w1_ref[...], preferred_element_type=jnp.float32) + b1_ref[...]
        h = jnp.maximum(h, 0.0)
        a = jnp.dot(h, w2_ref[...], preferred_element_type=jnp.float32) + b2_ref[...]
        attn_ref[...] = jax.nn.sigmoid(a)[:, :, None].astype(attn_ref.dtype)


# ----------------------------------------------------------------------------
# Fallback pass 2: lane-dense broadcast multiply (kept in the input dtype).
# ----------------------------------------------------------------------------
def _scale_kernel(x_ref, attn_ref, o_ref):
    o_ref[...] = x_ref[...] * attn_ref[...].astype(x_ref.dtype)


# ----------------------------------------------------------------------------
# Wrapper
# ----------------------------------------------------------------------------
def sequence_wise_attention(x, w1, b1, w2, b2, *, force_two_pass=False):
    """x: (B, C, L); w1: (C, H); b1: (1, H); w2: (H, C); b2: (1, C)."""
    B, C, L = x.shape
    H = w1.shape[1]
    itemsize = jnp.dtype(x.dtype).itemsize
    vmem_limit = _vmem_limit_bytes()

    row_bytes = C * L * itemsize
    # Fused path keeps in + out slabs double-buffered (~4x) plus small extras.
    slab_budget = vmem_limit // 5

    if row_bytes <= slab_budget and not force_two_pass:
        # ------------ fused single pass: out = x * sigmoid(FC(mean_L(x))) ----
        max_rows = max(1, slab_budget // row_bytes)
        if B >= 2:
            # Keep >= 2 batch tiles so both TensorCores are used on v7x.
            max_rows = min(max_rows, pl.cdiv(B, 2))
        b_tile = min(B, max_rows)
        nb = pl.cdiv(B, b_tile)

        return pl.pallas_call(
            functools.partial(_fused_kernel, seq_len=L),
            out_shape=jax.ShapeDtypeStruct((B, C, L), x.dtype),
            grid_spec=pltpu.PrefetchScalarGridSpec(
                num_scalar_prefetch=0,
                grid=(nb,),
                in_specs=[
                    pl.BlockSpec((b_tile, C, L), lambda b: (b, 0, 0)),
                    pl.BlockSpec((C, H), lambda b: (0, 0)),
                    pl.BlockSpec((1, H), lambda b: (0, 0)),
                    pl.BlockSpec((H, C), lambda b: (0, 0)),
                    pl.BlockSpec((1, C), lambda b: (0, 0)),
                ],
                out_specs=pl.BlockSpec((b_tile, C, L), lambda b: (b, 0, 0)),
            ),
            compiler_params=pltpu.CompilerParams(
                dimension_semantics=("parallel",),
                vmem_limit_bytes=vmem_limit,
            ),
            cost_estimate=pl.CostEstimate(
                flops=2 * B * C * L + 4 * B * C * H,
                transcendentals=B * C,
                bytes_accessed=2 * B * C * L * itemsize + (2 * C * H + H + C) * 4,
            ),
        )(x, w1, b1, w2, b2)

    # -------------- two-pass fallback (C*L slab too big for VMEM) ------------
    # Pass 1: attention gate (B, C, 1).  x is streamed once in lane-dense
    # (C, l_tile) blocks; channel sums accumulate in f32 scratch across the
    # "arbitrary" L axis; the tiny FC runs once per batch row at the last tile.
    blk1 = max(vmem_limit // 3, C * 128 * itemsize)
    l_tile1 = _lane_tile(L, blk1 // (C * itemsize))
    nl1 = pl.cdiv(L, l_tile1)
    needs_mask = (L % l_tile1) != 0

    attn = pl.pallas_call(
        functools.partial(_pool_fc_kernel, seq_len=L, needs_mask=needs_mask),
        out_shape=jax.ShapeDtypeStruct((B, C, 1), x.dtype),
        grid_spec=pltpu.PrefetchScalarGridSpec(
            num_scalar_prefetch=0,
            grid=(B, nl1),
            in_specs=[
                pl.BlockSpec((1, C, l_tile1), lambda b, l: (b, 0, l)),
                pl.BlockSpec((C, H), lambda b, l: (0, 0)),
                pl.BlockSpec((1, H), lambda b, l: (0, 0)),
                pl.BlockSpec((H, C), lambda b, l: (0, 0)),
                pl.BlockSpec((1, C), lambda b, l: (0, 0)),
            ],
            out_specs=pl.BlockSpec((1, C, 1), lambda b, l: (b, 0, 0)),
            scratch_shapes=[pltpu.VMEM((1, C), jnp.float32)],
        ),
        compiler_params=pltpu.CompilerParams(
            dimension_semantics=("parallel", "arbitrary"),
            vmem_limit_bytes=vmem_limit,
        ),
        cost_estimate=pl.CostEstimate(
            flops=2 * B * C * L + 4 * B * C * H,
            transcendentals=B * C,
            bytes_accessed=B * C * L * itemsize + B * C * itemsize
            + (2 * C * H + H + C) * 4,
        ),
    )(x, w1, b1, w2, b2)

    # Pass 2: out = x * attn with large lane-dense blocks, all axes parallel.
    blk2 = max(vmem_limit // 6, 8 * 128 * itemsize)
    if C % 8 != 0 or C * 128 * itemsize <= blk2:
        c_tile = C                                        # full extent: always legal
    else:
        c_tile = max(8, ((blk2 // (128 * itemsize)) // 8) * 8)
    l_tile2 = _lane_tile(L, blk2 // (c_tile * itemsize))

    return pl.pallas_call(
        _scale_kernel,
        out_shape=jax.ShapeDtypeStruct((B, C, L), x.dtype),
        grid_spec=pltpu.PrefetchScalarGridSpec(
            num_scalar_prefetch=0,
            grid=(B, pl.cdiv(C, c_tile), pl.cdiv(L, l_tile2)),
            in_specs=[
                pl.BlockSpec((1, c_tile, l_tile2), lambda b, c, l: (b, c, l)),
                pl.BlockSpec((1, c_tile, 1), lambda b, c, l: (b, c, 0)),
            ],
            out_specs=pl.BlockSpec((1, c_tile, l_tile2), lambda b, c, l: (b, c, l)),
        ),
        compiler_params=pltpu.CompilerParams(
            dimension_semantics=("parallel", "parallel", "parallel"),
            vmem_limit_bytes=vmem_limit,
        ),
        cost_estimate=pl.CostEstimate(
            flops=B * C * L,
            transcendentals=0,
            bytes_accessed=2 * B * C * L * itemsize + B * C * itemsize,
        ),
    )(x, attn)


def reference(x, w1, b1, w2, b2):
    avg = jnp.mean(x, axis=-1)                      # (B, C)
    h = jnp.maximum(avg @ w1 + b1, 0.0)             # (B, H)
    attn = jax.nn.sigmoid(h @ w2 + b2)              # (B, C)
    return x * attn[:, :, None]


if __name__ == "__main__":
    B, C, L = 2, 8, 256          # channels=8 -> hidden=4; small but lane-dense
    H = C // 2

    key = jax.random.PRNGKey(0)
    kx, k1, k2, k3, k4 = jax.random.split(key, 5)

    x = jax.random.normal(kx, (B, C, L), dtype=jnp.float32)

    # Deterministic parameter init (uniform, akin to PyTorch Linear default scale).
    bound1 = 1.0 / (C ** 0.5)
    bound2 = 1.0 / (H ** 0.5)
    w1 = jax.random.uniform(k1, (C, H), minval=-bound1, maxval=bound1, dtype=jnp.float32)
    b1 = jax.random.uniform(k2, (1, H), minval=-bound1, maxval=bound1, dtype=jnp.float32)
    w2 = jax.random.uniform(k3, (H, C), minval=-bound2, maxval=bound2, dtype=jnp.float32)
    b2 = jax.random.uniform(k4, (1, C), minval=-bound2, maxval=bound2, dtype=jnp.float32)

    out = sequence_wise_attention(x, w1, b1, w2, b2)
    out = jax.block_until_ready(out)

    ref = reference(x, w1, b1, w2, b2)
    assert out.shape == (B, C, L)
    assert jnp.allclose(out, ref, atol=1e-4, rtol=1e-4), "mismatch vs reference"

    print("KERNEL_OK")
</pallas_src>

<mosaic_0001>
module attributes {stable_mosaic.version = 11 : i64} {
  func.func @_fused_kernel(%arg0: i32, %arg1: memref<1x8x256xf32, #tpu.memory_space<vmem>>, %arg2: memref<8x4xf32, #tpu.memory_space<vmem>>, %arg3: memref<1x4xf32, #tpu.memory_space<vmem>>, %arg4: memref<4x8xf32, #tpu.memory_space<vmem>>, %arg5: memref<1x8xf32, #tpu.memory_space<vmem>>, %arg6: memref<1x8x256xf32, #tpu.memory_space<vmem>>) attributes {dimension_semantics = [#tpu.dimension_semantics<parallel>], iteration_bounds = array<i64: 2>, scalar_prefetch = 0 : i64, scratch_operands = 0 : i64, tpu.core_type = #tpu.core_type<tc>, window_params = [{transform_indices = @transform_0, window_bounds = array<i64: 1, 8, 256>}, {pipeline_mode = #tpu.pipeline_mode<synchronous>, transform_indices = @transform_1, window_bounds = array<i64: 8, 4>}, {pipeline_mode = #tpu.pipeline_mode<synchronous>, transform_indices = @transform_2, window_bounds = array<i64: 1, 4>}, {pipeline_mode = #tpu.pipeline_mode<synchronous>, transform_indices = @transform_3, window_bounds = array<i64: 4, 8>}, {pipeline_mode = #tpu.pipeline_mode<synchronous>, transform_indices = @transform_4, window_bounds = array<i64: 1, 8>}, {transform_indices = @transform_5, window_bounds = array<i64: 1, 8, 256>}]} {
    %c0 = arith.constant 0 : index
    %c0_0 = arith.constant 0 : index
    %c0_1 = arith.constant 0 : index
    %0 = vector.load %arg1[%c0, %c0_0, %c0_1] : memref<1x8x256xf32, #tpu.memory_space<vmem>>, vector<1x8x256xf32>
    %cst = arith.constant 1.000000e+00 : f32
    %1 = vector.broadcast %cst : f32 to vector<1x256x1xf32>
    %cst_2 = arith.constant dense<0.000000e+00> : vector<1x8x1xf32>
    %2 = tpu.matmul %0, %1, %cst_2 {dimension_numbers = #tpu.dot_dimension_numbers<[2], [1], [1], [2], [0, 0, 0, 1, 1, 2], [0], [0]>} : vector<1x8x256xf32>, vector<1x256x1xf32>, vector<1x8x1xf32> -> vector<1x8x1xf32>
    %cst_3 = arith.constant dense<0.000000e+00> : vector<1x8xf32>
    %3 = vector.multi_reduction <add>, %2, %cst_3 [2] : vector<1x8x1xf32> to vector<1x8xf32>
    %cst_4 = arith.constant 3.906250e-03 : f32
    %4 = vector.broadcast %cst_4 : f32 to vector<1x8xf32>
    %5 = arith.mulf %3, %4 : vector<1x8xf32>
    %c0_5 = arith.constant 0 : index
    %c0_6 = arith.constant 0 : index
    %6 = vector.load %arg2[%c0_5, %c0_6] : memref<8x4xf32, #tpu.memory_space<vmem>>, vector<8x4xf32>
    %cst_7 = arith.constant dense<0.000000e+00> : vector<1x4xf32>
    %7 = tpu.matmul %5, %6, %cst_7 {dimension_numbers = #tpu.dot_dimension_numbers<[1], [0], [0], [1], [0, 0, 1, 1], [], []>} : vector<1x8xf32>, vector<8x4xf32>, vector<1x4xf32> -> vector<1x4xf32>
    %c0_8 = arith.constant 0 : index
    %c0_9 = arith.constant 0 : index
    %8 = vector.load %arg3[%c0_8, %c0_9] : memref<1x4xf32, #tpu.memory_space<vmem>>, vector<1x4xf32>
    %9 = arith.addf %7, %8 : vector<1x4xf32>
    %cst_10 = arith.constant 0.000000e+00 : f32
    %10 = vector.broadcast %cst_10 : f32 to vector<1x4xf32>
    %11 = arith.maximumf %9, %10 : vector<1x4xf32>
    %c0_11 = arith.constant 0 : index
    %c0_12 = arith.constant 0 : index
    %12 = vector.load %arg4[%c0_11, %c0_12] : memref<4x8xf32, #tpu.memory_space<vmem>>, vector<4x8xf32>
    %cst_13 = arith.constant dense<0.000000e+00> : vector<1x8xf32>
    %13 = tpu.matmul %11, %12, %cst_13 {dimension_numbers = #tpu.dot_dimension_numbers<[1], [0], [0], [1], [0, 0, 1, 1], [], []>} : vector<1x4xf32>, vector<4x8xf32>, vector<1x8xf32> -> vector<1x8xf32>
    %c0_14 = arith.constant 0 : index
    %c0_15 = arith.constant 0 : index
    %14 = vector.load %arg5[%c0_14, %c0_15] : memref<1x8xf32, #tpu.memory_space<vmem>>, vector<1x8xf32>
    %15 = arith.addf %13, %14 : vector<1x8xf32>
    %16 = arith.negf %15 : vector<1x8xf32>
    %17 = math.exp %16 : vector<1x8xf32>
    %cst_16 = arith.constant 1.000000e+00 : f32
    %18 = vector.broadcast %cst_16 : f32 to vector<1x8xf32>
    %19 = arith.addf %18, %17 : vector<1x8xf32>
    %20 = arith.divf %18, %19 : vector<1x8xf32>
    %21 = vector.shape_cast %20 : vector<1x8xf32> to vector<1x8x1xf32>
    %c0_17 = arith.constant 0 : index
    %c0_18 = arith.constant 0 : index
    %c0_19 = arith.constant 0 : index
    %22 = vector.load %arg1[%c0_17, %c0_18, %c0_19] : memref<1x8x256xf32, #tpu.memory_space<vmem>>, vector<1x8x256xf32>
    %23 = vector.broadcast %21 : vector<1x8x1xf32> to vector<1x8x256xf32>
    %24 = arith.mulf %22, %23 : vector<1x8x256xf32>
    %c0_20 = arith.constant 0 : index
    %c0_21 = arith.constant 0 : index
    %c0_22 = arith.constant 0 : index
    %25 = vector.load %arg6[%c0_20, %c0_21, %c0_22] : memref<1x8x256xf32, #tpu.memory_space<vmem>>, vector<1x8x256xf32>
    tpu.vector_store %arg6[%c0_20, %c0_21, %c0_22], %24 {strides = array<i32>} : memref<1x8x256xf32, #tpu.memory_space<vmem>>, vector<1x8x256xf32>,
    return
  }
  func.func @transform_0(%arg0: i32) -> (i32, i32, i32) {
    %c0_i32 = arith.constant 0 : i32
    %c0_i32_0 = arith.constant 0 : i32
    %c0_i32_1 = arith.constant 0 : i32
    return %arg0, %c0_i32, %c0_i32_0 : i32, i32, i32
  }
  func.func @transform_1(%arg0: i32) -> (i32, i32) {
    %c0_i32 = arith.constant 0 : i32
    %c0_i32_0 = arith.constant 0 : i32
    %c0_i32_1 = arith.constant 0 : i32
    return %c0_i32, %c0_i32_0 : i32, i32
  }
  func.func @transform_2(%arg0: i32) -> (i32, i32) {
    %c0_i32 = arith.constant 0 : i32
    %c0_i32_0 = arith.constant 0 : i32
    %c0_i32_1 = arith.constant 0 : i32
    return %c0_i32, %c0_i32_0 : i32, i32
  }
  func.func @transform_3(%arg0: i32) -> (i32, i32) {
    %c0_i32 = arith.constant 0 : i32
    %c0_i32_0 = arith.constant 0 : i32
    %c0_i32_1 = arith.constant 0 : i32
    return %c0_i32, %c0_i32_0 : i32, i32
  }
  func.func @transform_4(%arg0: i32) -> (i32, i32) {
    %c0_i32 = arith.constant 0 : i32
    %c0_i32_0 = arith.constant 0 : i32
    %c0_i32_1 = arith.constant 0 : i32
    return %c0_i32, %c0_i32_0 : i32, i32
  }
  func.func @transform_5(%arg0: i32) -> (i32, i32, i32) {
    %c0_i32 = arith.constant 0 : i32
    %c0_i32_0 = arith.constant 0 : i32
    %c0_i32_1 = arith.constant 0 : i32
    return %arg0, %c0_i32, %c0_i32_0 : i32, i32, i32
  }
}

</mosaic_0001>

<bundles_post_ra>
// kernel: tpu_custom_call.1
= control target key start
LH: loop header
LB: loop body
LE: loop exit
PB: predicated region body
PF: predicated region fallthrough
CT: control target
= control target key end

     0   :  { %10 = vsyncpa [#allocation3], 0  ;;  %s1038_s0 = inlined_call_operand.hbm [shape: f32[2,8,256], index: 0, kind: input, shape index: {}]   ;;  %s1039_s1 = inlined_call_operand.vmem [shape: f32[8,4], index: 1, kind: input, shape index: {}]   ;;  %s1040_s2 = inlined_call_operand.vmem [shape: f32[1,4], index: 2, kind: input, shape index: {}]   ;;  %s1041_s3 = inlined_call_operand.vmem [shape: f32[4,8], index: 3, kind: input, shape index: {}]   ;;  %s1042_s4 = inlined_call_operand.vmem [shape: f32[1,8], index: 4, kind: input, shape index: {}]   ;;  %s1043_s5 = inlined_call_operand.hbm [shape: f32[2,8,256], index: 5, kind: output, shape index: {}]  }
   0x1   :  { %12 = vsyncpa [#allocation3 + $0x1], 0 }
   0x2   :  { %13 = vsyncpa [#allocation4], 0 }
   0x3   :  { %15 = vsyncpa [#allocation4 + $0x1], 0  ;;  %s857_s18 = smov 0   ;;  %s859_s19 = smov 0  }
   0x4   :  { %s861_s20 = smov 0   ;;  %s863_s21 = smov 0  }
   0x5 LB: > { %s878_s22 = sadd.s32 4294967295, %s819_s21   ;;  %s583_s23 = sadd.s32 4294967294, %s819_s21   ;;  %s819_s21 = sphi %s863_s21, %s1058_s21   ;;  %s815_s20 = sphi %s861_s20, %s1057_s20   ;;  %s811_s19 = sphi %s859_s19, %s1056_s19   ;;  %s807_s18 = sphi %s857_s18, %s1055_s18  }
   0x6   : > { %s882_s24 = sadd.s32 1, %s819_s21   ;;  %s28_s25 = sadd.s32 1, %s815_s20 }
   0x7   : > { %s25_s26 = ssub.s32 %s819_s21, %s882_s24  ;;  %p35_p0 = scmp.ne.s32.totalorder %s815_s20, %s811_s19 }
   0x8   : > { %p26_p1 = scmp.eq.s32.totalorder %s25_s26, 0  ;;  %p36_p2 = scmp.eq.s32.totalorder %s819_s21, 0 }
   0x9   : > { %p41_p3 = scmp.ne.s32.totalorder %s811_s19, %s807_s18  ;;  %p42_p4 = scmp.eq.s32.totalorder %s878_s22, 0 }
   0xa   : > { %s894_s27 = scalar_select %p26_p1, %s815_s20, %s28_s25  }
   0xb   : > { %p896_p5 = por %p36_p2, %p35_p0  ;;  %p900_p6 = por %p42_p4, %p41_p3 }
   0xc   : > { %p149_p7 = scmp.eq.s32.totalorder %s878_s22, 1  ;;  %p155_p8 = scmp.eq.s32.totalorder %s583_s23, 1 }
   0xd   : > { %p680_p10 = scmp.lt.s32.totalorder %s819_s21, 2  ;;  %s187_s7 = sand.u32 1, %s815_s20  }
   0xe   : > { %p907_p11 = por %p149_p7, %p35_p0  ;;  %p911_p12 = por %p155_p8, %p41_p3 }
   0xf   : > { %s601_s8 = sshll.u32 %s819_s21, 8  ;;  %s586_s9 = sshll.u32 %s187_s7, 4 }
  0x10   : > { %s1047_s30 = scalar_select %p907_p11, 1, 0 }
  0x11   : > { %s1048_s6 = scalar_select %p911_p12, 1, 0 }
  0x12   : > { %s920_s12 = scalar_lea.hbm %s1038_s0, %s601_s8  ;;  %s191_s13 = scalar_lea.vmem [#allocation2], %s586_s9 }
  0x13   : > { %s199_s14 = sshll.u32 %s191_s13, 4  ;;  %p924_p13 = pnand %p680_p10, %p896_p5  ;;  %s928_s14 = int_to_ptr.vmem [resolvable:$true] %s199_s14 }
  0x14   : > { %s188_s16 = scalar_lea.sflag [#allocation3], %s187_s7  ;;  %s723_s17 = scalar_lea.hbm %s920_s12, 256 }
  0x15   : > { %p724_p2 = scmp.ne.s32.totalorder %s920_s12, %s723_s17  ;;  %p725_p3 = pneg %p924_p13 }
  0x16   : > { %s728_s26 = scalar_lea.hbm %s1038_s0, 512  ;;  %p729_p5 = scmp.lt.u32.totalorder %s920_s12, %s1038_s0 }
  0x17   : > { %p726_p4 = pnand %p725_p3, %p724_p2  ;;  %p730_p8 = scmp.lt.u32.totalorder %s728_s26, %s723_s17 }
  0x18   : > { %p732_p9 = scmp.lt.u32.totalorder %s723_s17, %s920_s12 }
  0x19   : > { %p727_p7 = pneg %p726_p4  ;;  %p731_p10 = por %p730_p8, %p729_p5 }
  0x1b   : > { %p733_p0 = por %p732_p9, %p731_p10 }
  0x1d   : > { %p734_p1 = pnand %p733_p0, %p727_p7 }
  0x1f   : > { %737 = shalt.err (!%p734_p1)
}
  0x20   : > { %s738_s7 = scalar_lea.vmem %s928_s14, 256  ;;  %s821_s9 = smov [#allocation2]  }
  0x21   : > { %p739_p2 = scmp.ne.s32.totalorder %s928_s14, %s738_s7  ;;  %s743_s10 = sshll.u32 %s821_s9, 4  ;;  %s744_s10 = int_to_ptr.vmem [resolvable:$false] %s743_s10 }
  0x22   : > { %s745_s11 = scalar_lea.vmem %s744_s10, 512  ;;  %p746_p11 = scmp.lt.s32.totalorder %s928_s14, %s744_s10 }
  0x23   : > { %p741_p4 = pnand %p739_p2, %p725_p3  ;;  %p747_p5 = scmp.lt.s32.totalorder %s745_s11, %s738_s7 }
  0x25   : > { %p742_p12 = pneg %p741_p4  ;;  %p748_p8 = por %p747_p5, %p746_p11 }
  0x27   : > { %p749_p9 = pnand %p748_p8, %p742_p12 }
  0x29   : > { %752 = shalt.err (!%p749_p9)
}
  0x2a   : > { %675 = dma.hbm_to_vmem [thread:$0]  (!%p924_p13), %s920_s12, 256, %s928_s14, %s188_s16  }
  0x2b   : > { %p1050_p0 = scmp.lt.s32.totalorder %s819_s21, 3  ;;  %p1051_p1 = scmp.ge.s32.totalorder %s819_s21, 1 }
  0x2d   : > { %p205_p3 = pnand %p1051_p1, %p1050_p0 }
  0x2e   : > { %s962_s13 = sand.u32 (!%p205_p3), 1, %s811_s19  }
  0x2f   : > { %208 = sbr.rel (%p205_p3) target bundleno = 1024 (0x400), region = 40  ;;  %s590_s17 = sshll.u32 (!%p205_p3), %s962_s13, 4 }
  0x30   : > { %s211_s23 = scalar_lea.sflag (!%p205_p3), [#allocation3], %s962_s13  ;;  %s214_s15 = scalar_lea.vmem (!%p205_p3), [#allocation2], %s590_s17 }
  0x36   : > { %798 = dma.done.wait (%p900_p6), %s211_s23, 256  }
  0x37   : > { %800 = vsyncadd (%p900_p6), %s211_s23, 4294967040  ;;  %v822_v0 = vmov 1.0|1.0   ;;  %v972_v1 = vld [vmem:[%s214_s15 + $0x8] sm:$0xff]  ;;  %v241_v2 = vld [vmem:[%s214_s15] sm:$0xff]  ;;  %v823_v3 = vmov 0   ;;  %v321_v10 = vlaneseq }
  0x38   : > { %652 = vmatprep.subr.bf16.mxu0 %v822_v0  ;;  %307 = vmatprep.mubr.f32.mxu0 %v972_v1  ;;  %v824_v8 = vmov 0.0   ;;  %v315_v9 = vld [vmem:[%s1039_s1] sm:$0xff]  ;;  %vm825_vm0 = vmmov 0   ;;  %vm327_vm1 = vcmask 64512   ;;  %vm407_vm2 = vcmask 1043456   ;;  %s602_s7 = sshll.u32 %s878_s22, 8 }
  0x39   : > { %653 = vmatpush3.bf16.msra.mxu0 %v822_v0  ;;  %718 = vset.pattern.permute.xlu0 %v823_v3  ;;  %v322_v11 = vand.u32 127, %v321_v10  ;;  %v324_v12 = vshrl.u32 %v321_v10, 7  ;;  %v401_v16 = vld [vmem:[%s1041_s3] sm:$0xf]  ;;  %vm403_vm3 = vcmask 31744   ;;  %s240_s9 = scalar_lea.vmem [#allocation5], %s590_s17  ;;  %s994_s15 = scalar_lea.hbm %s1043_s5, %s602_s7 }
  0x3a   : > { %654 = vmatprep.subr.bf16.mxu0 %v822_v0  ;;  %642 = vmatprep.subr.mxu1 %v824_v8  ;;  %v316_v17 = vld [vmem:[%s1040_s2] sm:$0x1]  ;;  %s513_s10 = sshll.u32 %s240_s9, 4  ;;  %s499_s22 = scalar_lea.sflag [#allocation4], %s962_s13  ;;  %s996_s10 = int_to_ptr.vmem [resolvable:$true] %s513_s10 }
  0x3b   : > { %643 = vmatpush3.msra.mxu1 %v315_v9  ;;  %644 = vmatprep.mubr.msk.f32.mxu1 %vm825_vm0, %v824_v8  ;;  %v325_v13 = vsub.s32 %v322_v11, %v324_v12  ;;  %v402_v22 = vld [vmem:[%s1042_s4] sm:$0x1]  ;;  %v489_v29 = vsub.s32 0, %v324_v12  ;;  %s753_s29 = scalar_lea.vmem %s996_s10, 256  ;;  %p1052_p11 = scmp.ne.s32.totalorder %s1047_s30, 0 }
  0x3c   : > { %647 = vmatprep.subr.mxu1 %v824_v8  ;;  %p754_p6 = scmp.ne.s32.totalorder %s996_s10, %s753_s29  ;;  %s826_s17 = smov [#allocation5]  }
  0x3d   : > { %655 = vmatpush3.bf16.msra.mxu0 %v822_v0  ;;  %s757_s12 = sshll.u32 %s826_s17, 4  ;;  %s758_s12 = int_to_ptr.vmem [resolvable:$false] %s757_s12 }
  0x3e   : > { %656 = vmatprep.subr.bf16.mxu0 %v822_v0  ;;  %p755_p12 = pnand %p754_p6, %p1052_p11  ;;  %s759_s14 = scalar_lea.vmem %s758_s12, 512 }
  0x3f   : > { %p760_p7 = scmp.lt.s32.totalorder %s996_s10, %s758_s12  ;;  %p761_p10 = scmp.lt.s32.totalorder %s759_s14, %s753_s29 }
  0x40   : > { %p756_p13 = pneg %p755_p12 }
  0x41   : > { %657 = vmatpush3.bf16.msra.mxu0 %v822_v0  ;;  %p762_p2 = por %p761_p10, %p760_p7 }
  0x42   : > { %658 = vmatprep.subr.bf16.mxu0 %v822_v0 }
  0x43   : > { %p763_p4 = pnand %p762_p2, %p756_p13 }
  0x45   : > { %659 = vmatpush3.bf16.msra.mxu0 %v822_v0 }
  0x46   : > { %660 = vmatprep.subr.bf16.mxu0 %v822_v0 }
  0x49   : > { %661 = vmatpush3.bf16.msra.mxu0 %v822_v0 }
  0x4a   : > { %662 = vmatprep.subr.bf16.mxu0 %v822_v0 }
  0x4d   : > { %663 = vmatpush3.bf16.msra.mxu0 %v822_v0 }
  0x4e   : > { %664 = vmatprep.subr.bf16.mxu0 %v822_v0 }
  0x51   : > { %665 = vmatpush3.bf16.msra.mxu0 %v822_v0 }
  0x52   : > { %666 = vmatprep.subr.bf16.mxu0 %v822_v0 }
  0x55   : > { %667 = vmatpush3.bf16.msra.mxu0 %v822_v0 }
  0x58   : > { %308 = vmatmul.mubr.f32.vlgmr.msra.gmra.mrb[0].mxu0 %v241_v2 }
 0x12b   : > { %v635_v4 = vpop.f32.mrb[0].mxu0 }
 0x12c   : > { %v636_v5 = vpop.f32.mrb[1].mxu0 }
 0x12d   : > { %v637_v6 = vadd.f32 %v636_v5, %v635_v4 }
 0x12f   : > { %v314_v7 = vmul.f32 0.00390625, %v637_v6 }
 0x131   : > { %319 = vperm.xlu0 %718, %v314_v7  }
 0x1b0   : > { %v320_v14 = vpop.permute.xlu0 %319 }
 0x1b1   : > { %v326_v15 = vrot.slane %v320_v14, %v325_v13 }
 0x1b3   : > { %645 = vmatmul.mubr.msk.f32.vlgmr.msra.gmra.mrb[0].mxu1 %vm327_vm1, %v326_v15 }
 0x1b4   : > { %649 = vmatprep.mubr.msk.f32.mxu1 %vm825_vm0, %v824_v8  ;;  %648 = vmatpush3.msk.msra.mxu1 %vm407_vm2, %v401_v16 }
 0x286   : > { %v396_v18 = vpop.f32.mrb[0].mxu1 }
 0x287   : > { %v397_v19 = vadd.f32 %v396_v18, %v316_v17  ;;  %v646_v20 = vpop.f32.mrb[1].mxu1 }
 0x289   : > { %v400_v21 = vmax.f32 %v397_v19, 0.0 }
 0x28b   : > { %650 = vmatmul.mubr.msk.f32.vlgmr.msra.gmra.mrb[2].mxu1 %vm403_vm3, %v400_v21 }
 0x35e   : > { %v477_v23 = vpop.f32.mrb[2].mxu1 }
 0x35f   : > { %v478_v24 = vadd.f32 %v477_v23, %v402_v22  ;;  %v651_v25 = vpop.f32.mrb[3].mxu1 }
 0x361   : > { %v595_v26 = vmul.f32 -1.442695, %v478_v24 }
 0x363   : > { %719 = vpow2.f32 %v595_v26 }
 0x36d   : > { %v720_v27 = vpop.eup %719 }
 0x36e   : > { %v484_v28 = vadd.f32 1.0, %v720_v27 }
 0x370   : > { %721 = vrcp.f32 %v484_v28 }
 0x37a   : > { %v722_v30 = vpop.eup %721 }
 0x37b   : > { %v490_v31 = vrot.slane %v722_v30, %v489_v29 }
 0x37d   : > { %492 = vbcast.lane.b32.xlu0 %v490_v31, 256 }
 0x3ef   : > { %v493_v32 = vpop.permute.xlu0 %492 }
 0x3f0   : > { %v494_v33 = vmul.f32 %v493_v32, %v241_v2  ;;  %v495_v34 = vmul.f32 %v493_v32, %v972_v1 }
 0x3f2   : > { %496 = vst [vmem:[%s240_s9] sm:$0xff] %v494_v33  ;;  %497 = vst [vmem:[%s240_s9 + $0x8] sm:$0xff] %v495_v34 }
 0x3f3   : > { %766 = shalt.err (!%p763_p4)
}
 0x3f4   : > { %s767_s13 = scalar_lea.hbm %s994_s15, 256  ;;  %s771_s26 = scalar_lea.hbm %s1043_s5, 512 }
 0x3f5   : > { %p768_p5 = scmp.ne.s32.totalorder %s994_s15, %s767_s13  ;;  %p772_p0 = scmp.lt.u32.totalorder %s994_s15, %s1043_s5 }
 0x3f6   : > { %p773_p1 = scmp.lt.u32.totalorder %s771_s26, %s767_s13  ;;  %p775_p6 = scmp.lt.u32.totalorder %s767_s13, %s994_s15 }
 0x3f7   : > { %p769_p8 = pnand %p768_p5, %p1052_p11 }
 0x3f8   : > { %p774_p3 = por %p773_p1, %p772_p0 }
 0x3f9   : > { %p770_p9 = pneg %p769_p8 }
 0x3fa   : > { %p776_p12 = por %p775_p6, %p774_p3 }
 0x3fc   : > { %p777_p13 = pnand %p776_p12, %p770_p9 }
 0x3fe   : > { %780 = shalt.err (!%p777_p13)
}
 0x3ff   : > { %670 = dma.vmem_to_hbm [thread:$0]  (%p1052_p11), %s996_s10, 256, %s994_s15, %s499_s22  }
 0x400 PF: > { %s525_s7 = sand.u32 1, %s807_s18   ;;  %p1053_p7 = scmp.ne.s32.totalorder %s1048_s6, 0 }
 0x401   : > { %p1054_p10 = scmp.ge.s32.totalorder %s819_s21, 2  ;;  %s526_s9 = scalar_lea.sflag [#allocation4], %s525_s7 }
 0x403   : > { %p677_p2 = pnand %p1054_p10, %p1053_p7 }
 0x405   : > { %802 = dma.done.wait (!%p677_p2), %s526_s9, 256  }
 0x406   : > { %804 = vsyncadd (!%p677_p2), %s526_s9, 4294967040  ;;  %p18_p4 = scmp.ge.s32.totalorder %s882_s24, 4   ;;  %s1055_s18 = smov %s811_s19 }
 0x407   : > { %s1056_s19 = smov %s815_s20  ;;  %s1057_s20 = smov %s894_s27 }
 0x408   : > { %s1058_s21 = smov %s882_s24  ;;  %20 = sbr.rel (!%p18_p4) target bundleno = 5 (0x5), region = 85 }
 0x40f   :  { %531 = vsyncpa [#allocation3], 1 }
 0x410   :  { %533 = vsyncpa [#allocation3 + $0x1], 1 }
 0x411   :  { %534 = vsyncpa [#allocation4], 1 }
 0x412   :  { %536 = vsyncpa [#allocation4 + $0x1], 1 }

</bundles_post_ra>
